<compile_context>
chip_gen: v6e
topology: v6e:2x2x1
jax: 0.10.0
libtpu: 0.0.40
codegen_flags: <defaults>
</compile_context>

<pallas_src>
import jax
import jax.numpy as jnp
from jax.experimental import pallas as pl
from jax.experimental.pallas import tpu as pltpu


def _normalization_kernel(x_ref, stats_ref, out_ref):
    # x_ref/out_ref: (br, bl) tile; stats_ref: (br, 2) f32 with [:,0]=mean, [:,1]=1/std.
    stats = stats_ref[...]
    mean = stats[:, 0:1]        # (br, 1) -> lane-broadcast
    inv_std = stats[:, 1:2]
    x = x_ref[...].astype(jnp.float32)
    out_ref[...] = ((x - mean) * inv_std).astype(out_ref.dtype)


def _chip_tile_budget():
    """(tile byte target, vmem_limit_bytes or None) for the local TPU generation."""
    try:
        kind = jax.devices()[0].device_kind.lower()
    except Exception:
        kind = ""
    if any(tag in kind for tag in ("v6", "v7", "7x")):
        # High HBM BW: 4 MiB tiles amortize the ~0.35 us/step grid overhead.
        # Budget scoped VMEM explicitly (v7x has only 64 MiB physical VMEM).
        return 4 << 20, 48 << 20
    # v5e and older: default scoped VMEM is 16 MiB; 2 MiB tiles, double-buffered
    # in+out (~8 MiB), fit comfortably and step overhead is already <10% there.
    return 2 << 20, None


def _pick_blocks(R, L, itemsize, target_bytes):
    """Largest (su,128)-aligned tile under `target_bytes` for an (R, L) array."""
    su = 8 * max(1, 4 // itemsize)       # sublane unit: 8 f32 / 16 bf16 / 32 int8
    # Lane (last) axis: multiple of 128 when possible, capped by the byte target.
    if L >= 128:
        lane_cap = max(128, (target_bytes // (su * itemsize)) // 128 * 128)
        bl = min((L // 128) * 128, lane_cap)
    else:
        bl = L                           # tiny last dim: full extent
    # Sublane axis: multiple of su, capped so the tile stays near the target.
    if R >= su:
        row_cap = max(su, (target_bytes // max(bl * itemsize, 1)) // su * su)
        br = min((R // su) * su, row_cap)
    else:
        br = R                           # tiny row dim: full extent
    # Give the grid >= 2 steps when there is enough work (shards across v7x's 2 TCs).
    if pl.cdiv(R, br) * pl.cdiv(L, bl) < 2 and R >= 2 * su:
        br = max(su, ((R // 2) // su) * su)
    return br, bl


def _plane_lane_width(L, R, su):
    """Multiple of 128 dividing L; capped so the split yields roughly >= su rows."""
    cap = min(2048, max(128, ((L * R) // su) // 128 * 128))
    bw = 128
    d = 256
    while d <= cap:
        if L % d == 0:
            bw = d
        d += 128
    return bw


def normalization(img, mean, std):
    """(img - mean[None,:,None,None]) / std[None,:,None,None] for an NCHW image."""
    N, C, H, W = img.shape
    assert mean.shape == (C,) and std.shape == (C,)

    itemsize = jnp.dtype(img.dtype).itemsize
    target_bytes, vmem_limit = _chip_tile_budget()
    su = 8 * max(1, 4 // itemsize)

    R, L = N * C, H * W
    # Per-plane (mean, 1/std) kept in f32 regardless of the image dtype.
    mean_f32 = jnp.tile(mean.astype(jnp.float32), N)
    inv_f32 = jnp.tile(1.0 / std.astype(jnp.float32), N)
    stats = jnp.stack([mean_f32, inv_f32], axis=-1)          # (N*C, 2)

    if R < su and L % 128 == 0 and L >= 256:
        # Few planes: split each contiguous plane into (L//bw, bw) rows so tiles are
        # sublane-dense instead of wasting (su - R)/su of every vreg / VMEM tile.
        bw = _plane_lane_width(L, R, su)
        rows_per_plane = L // bw
        Rv, Lv = R * rows_per_plane, bw
        stats = jnp.repeat(stats, rows_per_plane, axis=0)    # (Rv, 2)
    else:
        Rv, Lv = R, L

    x = img.reshape(Rv, Lv)                                  # free, contiguous view

    br, bl = _pick_blocks(Rv, Lv, itemsize, target_bytes)
    grid = (pl.cdiv(Rv, br), pl.cdiv(Lv, bl))                # ragged edges are masked

    out = pl.pallas_call(
        _normalization_kernel,
        out_shape=jax.ShapeDtypeStruct((Rv, Lv), img.dtype),
        grid=grid,
        in_specs=[
            pl.BlockSpec((br, bl), lambda i, j: (i, j)),
            pl.BlockSpec((br, 2), lambda i, j: (i, 0)),
        ],
        out_specs=pl.BlockSpec((br, bl), lambda i, j: (i, j)),
        compiler_params=pltpu.CompilerParams(
            dimension_semantics=("parallel", "parallel"),
            vmem_limit_bytes=vmem_limit,
        ),
    )(x, stats)

    return out.reshape(N, C, H, W)


if __name__ == "__main__":
    key = jax.random.PRNGKey(0)

    def _ref(img, mean, std):
        return (img - mean[None, :, None, None]) / std[None, :, None, None]

    # Small shapes covering both tiling paths and ragged edge blocks.
    cases = [
        (2, 3, 16, 16),   # plane-split path (N*C < 8)
        (1, 3, 32, 64),   # plane-split path with repeated stats rows
        (2, 5, 16, 24),   # generic 2-D path (N*C >= 8), ragged row block
    ]
    means_all = [0.485, 0.456, 0.406, 0.5, 0.45]
    stds_all = [0.229, 0.224, 0.225, 0.21, 0.2]

    keys = jax.random.split(key, len(cases))
    for case_key, (N, C, H, W) in zip(keys, cases):
        img = jax.random.uniform(case_key, (N, C, H, W), dtype=jnp.float32)
        mean = jnp.array(means_all[:C], dtype=jnp.float32)
        std = jnp.array(stds_all[:C], dtype=jnp.float32)

        out = jax.block_until_ready(normalization(img, mean, std))
        ref = _ref(img, mean, std)

        assert out.shape == ref.shape and out.dtype == ref.dtype
        # (x - m) * (1/s) vs (x - m) / s differs by a couple of f32 ulps.
        assert jnp.allclose(out, ref, rtol=1e-5, atol=1e-6), (N, C, H, W)

    print("KERNEL_OK")
</pallas_src>

<mosaic_0001>
module attributes {stable_mosaic.version = 11 : i64} {
  func.func @_normalization_kernel(%arg0: i32, %arg1: i32, %arg2: memref<8x128xf32, #tpu.memory_space<vmem>>, %arg3: memref<8x2xf32, #tpu.memory_space<vmem>>, %arg4: memref<8x128xf32, #tpu.memory_space<vmem>>) attributes {dimension_semantics = [#tpu.dimension_semantics<parallel>, #tpu.dimension_semantics<parallel>], iteration_bounds = array<i64: 2, 1>, scalar_prefetch = 0 : i64, scratch_operands = 0 : i64, tpu.core_type = #tpu.core_type<tc>, window_params = [{transform_indices = @transform_0, window_bounds = array<i64: 8, 128>}, {transform_indices = @transform_1, window_bounds = array<i64: 8, 2>}, {transform_indices = @transform_2, window_bounds = array<i64: 8, 128>}]} {
    %c0 = arith.constant 0 : index
    %c0_0 = arith.constant 0 : index
    %0 = vector.load %arg3[%c0, %c0_0] : memref<8x2xf32, #tpu.memory_space<vmem>>, vector<8x2xf32>
    %1 = vector.extract_strided_slice %0 {offsets = [0, 0], sizes = [8, 1], strides = [1, 1]} : vector<8x2xf32> to vector<8x1xf32>
    %2 = vector.extract_strided_slice %0 {offsets = [0, 1], sizes = [8, 1], strides = [1, 1]} : vector<8x2xf32> to vector<8x1xf32>
    %c0_1 = arith.constant 0 : index
    %c0_2 = arith.constant 0 : index
    %3 = vector.load %arg2[%c0_1, %c0_2] : memref<8x128xf32, #tpu.memory_space<vmem>>, vector<8x128xf32>
    %4 = vector.broadcast %1 : vector<8x1xf32> to vector<8x128xf32>
    %5 = arith.subf %3, %4 : vector<8x128xf32>
    %6 = vector.broadcast %2 : vector<8x1xf32> to vector<8x128xf32>
    %7 = arith.mulf %5, %6 : vector<8x128xf32>
    %c0_3 = arith.constant 0 : index
    %c0_4 = arith.constant 0 : index
    %8 = vector.load %arg4[%c0_3, %c0_4] : memref<8x128xf32, #tpu.memory_space<vmem>>, vector<8x128xf32>
    tpu.vector_store %arg4[%c0_3, %c0_4], %7 {strides = array<i32>} : memref<8x128xf32, #tpu.memory_space<vmem>>, vector<8x128xf32>,
    return
  }
  func.func @transform_0(%arg0: i32, %arg1: i32) -> (i32, i32) {
    %c0_i32 = arith.constant 0 : i32
    return %arg0, %arg1 : i32, i32
  }
  func.func @transform_1(%arg0: i32, %arg1: i32) -> (i32, i32) {
    %c0_i32 = arith.constant 0 : i32
    %c0_i32_0 = arith.constant 0 : i32
    return %arg0, %c0_i32 : i32, i32
  }
  func.func @transform_2(%arg0: i32, %arg1: i32) -> (i32, i32) {
    %c0_i32 = arith.constant 0 : i32
    return %arg0, %arg1 : i32, i32
  }
}

</mosaic_0001>

<bundles_post_ra>
// kernel: tpu_custom_call.1
= control target key start
LH: loop header
LB: loop body
LE: loop exit
PB: predicated region body
PF: predicated region fallthrough
CT: control target
= control target key end

     0   :  { %7 = vsyncpa [#allocation3], 0  ;;  %s562_s0 = inlined_call_operand.vmem [shape: f32[12,128], index: 0, kind: input, shape index: {}]   ;;  %s563_s1 = inlined_call_operand.vmem [shape: f32[12,2], index: 1, kind: input, shape index: {}]   ;;  %s564_s2 = inlined_call_operand.hbm [shape: f32[12,128], index: 2, kind: output, shape index: {}]  }
   0x1   :  { %9 = vsyncpa [#allocation3 + $0x1], 0  ;;  %s460_s9 = smov 0   ;;  %s462_s10 = smov 0  }
   0x2   :  { %s464_s11 = smov 0   ;;  %s466_s12 = smov 0  }
   0x3   :  { %s468_s13 = smov 0   ;;  %s470_s14 = smov 0  }
   0x4 LB: > { %s293_s15 = sadd.s32 4294967295, %s440_s14   ;;  %s294_s16 = sadd.s32 4294967294, %s440_s14   ;;  %s440_s14 = sphi %s470_s14, %s15_s14   ;;  %s436_s13 = sphi %s468_s13, %s571_s13   ;;  %s432_s12 = sphi %s466_s12, %s570_s12   ;;  %s428_s11 = sphi %s464_s11, %s569_s11   ;;  %s424_s10 = sphi %s462_s10, %s568_s10   ;;  %s420_s9 = sphi %s460_s9, %s567_s9  }
   0x5   : > { %s27_s17 = sadd.s32 1, %s436_s13  ;;  %s90_s18 = sadd.s32 1, %s428_s11 }
   0x6   : > { %p29_p0 = scmp.ge.s32.totalorder %s27_s17, 2  ;;  %p100_p1 = scmp.ne.s32.totalorder %s428_s11, %s424_s10 }
   0x7   : > { %p101_p2 = scmp.eq.s32.totalorder %s293_s15, 1  ;;  %p106_p3 = scmp.ne.s32.totalorder %s424_s10, %s420_s9 }
   0x8   : > { %s573_s17 = smov (%p29_p0, %s27_s17), 0  ;;  %p107_p5 = scmp.eq.s32.totalorder %s294_s16, 1 }
   0x9   : > { %p500_p4 = por %p101_p2, %p100_p1  ;;  %s85_s20 = ssub.s32 %s436_s13, %s573_s17 }
   0xa   : > { %p297_p6 = scmp.ge.s32.totalorder %s440_s14, 1  ;;  %p88_p7 = scmp.eq.s32.totalorder %s85_s20, 0 }
   0xb   : > { %p507_p8 = por %p107_p5, %p106_p3  ;;  %p142_p9 = scmp.lt.s32.totalorder %s440_s14, 3 }
   0xc   : > { %s513_s22 = scalar_select %p88_p7, %s428_s11, %s90_s18  }
   0xd   : > { %p143_p10 = pnand %p297_p6, %p142_p9 }
   0xe   : > { %p170_p11 = scmp.lt.s32.totalorder (!%p143_p10), %s432_s12, 1  ;;  %s167_s28 = sand.u32 (!%p143_p10), 1, %s424_s10  }
   0xf   : > { %146 = sbr.rel (%p143_p10) target bundleno = 169 (0xa9), region = 28  ;;  %s298_s29 = sshll.u32 (!%p143_p10), %s167_s28, 3 }
  0x10   : > { %s302_s5 = sshll.u32 (!%p143_p10), %s432_s12, 7  ;;  %s169_s6 = scalar_lea.vmem (!%p143_p10), [#allocation2], %s298_s29 }
  0x11   : > { %s210_s7 = sshll.u32 (!%p143_p10), %s169_s6, 4  ;;  %s208_s16 = scalar_lea.hbm (!%p143_p10), %s564_s2, %s302_s5  ;;  %s211_s7 = int_to_ptr.vmem [resolvable:$true] %s210_s7 }
  0x12   : > { %s196_s18 = scalar_lea.sflag (!%p143_p10), [#allocation3], %s167_s28  ;;  %s364_s20 = scalar_lea.vmem (!%p143_p10), %s211_s7, 128 }
  0x13   : > { %p365_p12 = scmp.ne.s32.totalorder (!%p143_p10), %s211_s7, %s364_s20 }
  0x14   : > { %v442_v0 = vmov 0   ;;  %s171_s23 = scalar_select %p170_p11, %s432_s12, 1  ;;  %v443_v2 = vmov 1  }
  0x15   : > { %362 = vset.pattern.permute.xlu0 %v442_v0  ;;  %p366_p13 = pnand %p365_p12, %p500_p4 }
  0x16   : > { %s299_s24 = sshll.u32 %s171_s23, 3  ;;  %s444_s23 = smov [#allocation2]  }
  0x17   : > { %s180_s27 = scalar_lea.vmem %s563_s1, %s299_s24  ;;  %s176_s4 = scalar_lea.vmem %s562_s0, %s299_s24 }
  0x18   : > { %v181_v1 = vld [vmem:[%s180_s27] sm:$0xff]  ;;  %p367_p0 = pneg %p366_p13  ;;  %s368_s24 = sshll.u32 %s444_s23, 4  ;;  %s369_s24 = int_to_ptr.vmem [resolvable:$false] %s368_s24 }
  0x19   : > { %185 = vperm.xlu0 %362, %v181_v1   ;;  %v182_v4 = vld [vmem:[%s176_s4] sm:$0xff]  ;;  %s370_s12 = scalar_lea.vmem %s369_s24, 256  ;;  %p371_p1 = scmp.lt.s32.totalorder %s211_s7, %s369_s24 }
  0x1a   : > { %p372_p2 = scmp.lt.s32.totalorder %s370_s12, %s364_s20 }
  0x1c   : > { %p373_p3 = por %p372_p2, %p371_p1 }
  0x1d   : > { %363 = vset.pattern.permute.xlu0 %v443_v2 }
  0x1e   : > { %190 = vperm.xlu0 %363, %v181_v1   ;;  %p374_p5 = pnand %p373_p3, %p367_p0 }
  0x94   : > { %v186_v3 = vpop.permute.xlu0 %185 }
  0x95   : > { %v188_v5 = vsub.f32 %v182_v4, %v186_v3 }
  0x99   : > { %v191_v6 = vpop.permute.xlu0 %190 }
  0x9a   : > { %v193_v7 = vmul.f32 %v191_v6, %v188_v5 }
  0x9c   : > { %194 = vst [vmem:[%s169_s6] sm:$0xff] %v193_v7 }
  0x9d   : > { %377 = shalt.err (!%p374_p5)
}
  0x9e   : > { %s378_s25 = scalar_lea.hbm %s208_s16, 128  ;;  %s382_s28 = scalar_lea.hbm %s564_s2, 256 }
  0x9f   : > { %p379_p6 = scmp.ne.s32.totalorder %s208_s16, %s378_s25  ;;  %p383_p10 = scmp.lt.s32.totalorder %s208_s16, %s564_s2 }
  0xa0   : > { %p384_p11 = scmp.lt.s32.totalorder %s382_s28, %s378_s25 }
  0xa1   : > { %p380_p7 = pnand %p379_p6, %p500_p4 }
  0xa2   : > { %p385_p12 = por %p384_p11, %p383_p10 }
  0xa3   : > { %p381_p9 = pneg %p380_p7 }
  0xa5   : > { %p386_p13 = pnand %p385_p12, %p381_p9 }
  0xa7   : > { %389 = shalt.err (!%p386_p13)
}
  0xa8   : > { %305 = dma.vmem_to_hbm [thread:$0]  (%p500_p4), %s211_s7, 128, %s208_s16, %s196_s18  }
  0xa9 PF: > { %p311_p0 = scmp.ge.s32.totalorder %s440_s14, 2  ;;  %s222_s3 = sand.u32 1, %s420_s9  }
  0xaa   : > { %s223_s4 = scalar_lea.sflag [#allocation3], %s222_s3 }
  0xab   : > { %p308_p1 = pnand %p311_p0, %p507_p8 }
  0xad   : > { %p309_p2 = pneg %p308_p1 }
  0xaf   : > { %415 = dma.done.wait (%p309_p2), %s223_s4, 128  }
  0xb0   : > { %417 = vsyncadd (%p309_p2), %s223_s4, 4294967168  ;;  %s15_s14 = sadd.s32 1, %s440_s14   ;;  %s567_s9 = smov %s424_s10 }
  0xb1   : > { %p12_p3 = scmp.ge.s32.totalorder %s15_s14, 4   ;;  %s568_s10 = smov %s428_s11 }
  0xb2   : > { %s569_s11 = smov %s513_s22  ;;  %s570_s12 = smov %s436_s13 }
  0xb3   : > { %s571_s13 = smov %s573_s17  ;;  %14 = sbr.rel (!%p12_p3) target bundleno = 4 (0x4), region = 66 }
  0xb8   :  { %228 = vsyncpa [#allocation3], 1 }
  0xb9   :  { %230 = vsyncpa [#allocation3 + $0x1], 1 }

</bundles_post_ra>
